<compile_context>
chip_gen: v6e
topology: v6e:2x2x1
jax: 0.10.0
libtpu: 0.0.40
codegen_flags: <defaults>
</compile_context>

<pallas_src>
import jax
import jax.numpy as jnp
from jax.experimental import pallas as pl
from jax.experimental.pallas import tpu as pltpu


def _interp_matrix(in_size: int, out_size: int) -> jnp.ndarray:
    """Bilinear (linear, per-axis) interpolation matrix, align_corners=True."""
    idx = jnp.arange(out_size, dtype=jnp.float32)
    if out_size > 1:
        src = idx * (in_size - 1) / (out_size - 1)
    else:
        src = jnp.zeros_like(idx)
    i0 = jnp.clip(jnp.floor(src).astype(jnp.int32), 0, in_size - 1)
    i1 = jnp.clip(i0 + 1, 0, in_size - 1)
    frac = src - i0.astype(jnp.float32)
    rows = jnp.arange(out_size)
    w = jnp.zeros((out_size, in_size), dtype=jnp.float32)
    w = w.at[rows, i0].add(1.0 - frac)
    w = w.at[rows, i1].add(frac)
    return w


def _pick_col_tile(howo: int, cap: int = 512) -> int:
    """Largest 128-multiple divisor of howo that is <= cap; else the full dim."""
    if howo <= cap:
        return howo
    for t in range(cap, 127, -128):
        if t % 128 == 0 and howo % t == 0:
            return t
    return howo


def _upsample2d_kernel(x_ref, wcb_ref, wsp_t_ref, o_ref):
    # x_ref:     (M, HW)      flattened input rows (M = N*C), lane-dense
    # wcb_ref:   (M, M)       block-diagonal channel-mix kron(I_N, Wc)
    # wsp_t_ref: (HW, TN)     column tile of the fused spatial-interp matrix (transposed)
    # o_ref:     (M, TN)      lane-dense output tile
    x = x_ref[...]
    # 1x1 conv (channel mix) FIRST -- operates on the small (M, HW) tensor.
    xc = jnp.dot(wcb_ref[...], x.astype(jnp.float32),
                 preferred_element_type=jnp.float32)
    # Fused bilinear interpolation over both spatial axes as one MXU matmul.
    y = jnp.dot(xc, wsp_t_ref[...], preferred_element_type=jnp.float32)
    o_ref[...] = y.astype(o_ref.dtype)


def upsample2d(x: jnp.ndarray, conv_weight: jnp.ndarray) -> jnp.ndarray:
    """x: (N, C, H, W); conv_weight: (C, C, 1, 1) -> output (N, C, 2H, 2W)."""
    N, C, H, W = x.shape
    Ho, Wo = 2 * H, 2 * W
    HW, HoWo = H * W, Ho * Wo
    M = N * C

    wh = _interp_matrix(H, Ho)                               # (Ho, H)
    ww = _interp_matrix(W, Wo)                               # (Wo, W)
    # Fused spatial interpolation matrix (transposed): (HW, HoWo).
    # Wsp[o*Wo+p, h*W+w] = Wh[o, h] * Ww[p, w].
    # TODO(synk): for large H*W (kron matrix comparable to VMEM) switch to the separable
    #             two-matmul form with row tiling instead of the fused kron matrix.
    wsp_t = jnp.kron(wh, ww).T                               # (HW, HoWo)

    wc = conv_weight.reshape(C, C).astype(jnp.float32)       # (C_out, C_in)
    wcb = jnp.kron(jnp.eye(N, dtype=jnp.float32), wc)        # (M, M) block-diagonal

    x2d = x.reshape(M, HW)                                   # lane-dense input slab

    tn = _pick_col_tile(HoWo)
    grid = (HoWo // tn,)

    y2d = pl.pallas_call(
        _upsample2d_kernel,
        out_shape=jax.ShapeDtypeStruct((M, HoWo), x.dtype),
        grid_spec=pltpu.PrefetchScalarGridSpec(
            num_scalar_prefetch=0,
            grid=grid,
            in_specs=[
                pl.BlockSpec((M, HW), lambda j: (0, 0)),     # full input, resident
                pl.BlockSpec((M, M), lambda j: (0, 0)),      # channel-mix, resident
                pl.BlockSpec((HW, tn), lambda j: (0, j)),    # column tile of Wsp^T
            ],
            out_specs=pl.BlockSpec((M, tn), lambda j: (0, j)),
        ),
        compiler_params=pltpu.CompilerParams(
            dimension_semantics=("parallel",)),
    )(x2d, wcb, wsp_t)

    return y2d.reshape(N, C, Ho, Wo)


def _reference(x, conv_weight):
    """Pure-JAX reference: bilinear(align_corners=True) x2 + 1x1 conv, NCHW."""
    N, C, H, W = x.shape
    wh = _interp_matrix(H, 2 * H)
    ww = _interp_matrix(W, 2 * W)
    up = jnp.einsum('oh,nchw->ncow', wh, x)
    up = jnp.einsum('pw,ncow->ncop', ww, up)
    wc = conv_weight.reshape(C, C)
    return jnp.einsum('kc,ncop->nkop', wc, up)


if __name__ == "__main__":
    key = jax.random.PRNGKey(0)
    k_x, k_w = jax.random.split(key)

    N, C, H, W = 2, 4, 16, 16
    x = jax.random.normal(k_x, (N, C, H, W), dtype=jnp.float32)
    # Deterministic init of Conv2D(channels, channels, 1, bias=False) weight: (C, C, 1, 1)
    conv_w = jax.random.normal(k_w, (C, C, 1, 1), dtype=jnp.float32) * 0.1

    out = upsample2d(x, conv_w)
    out = jax.block_until_ready(out)

    ref = _reference(x, conv_w)
    assert out.shape == (N, C, 2 * H, 2 * W)
    assert jnp.allclose(out, ref, atol=1e-4, rtol=1e-4)

    print("KERNEL_OK")
</pallas_src>

<mosaic_0001>
module attributes {stable_mosaic.version = 11 : i64} {
  func.func @_upsample2d_kernel(%arg0: i32, %arg1: memref<8x256xf32, #tpu.memory_space<vmem>>, %arg2: memref<8x8xf32, #tpu.memory_space<vmem>>, %arg3: memref<256x512xf32, #tpu.memory_space<vmem>>, %arg4: memref<8x512xf32, #tpu.memory_space<vmem>>) attributes {dimension_semantics = [#tpu.dimension_semantics<parallel>], iteration_bounds = array<i64: 2>, scalar_prefetch = 0 : i64, scratch_operands = 0 : i64, tpu.core_type = #tpu.core_type<tc>, window_params = [{pipeline_mode = #tpu.pipeline_mode<synchronous>, transform_indices = @transform_0, window_bounds = array<i64: 8, 256>}, {pipeline_mode = #tpu.pipeline_mode<synchronous>, transform_indices = @transform_1, window_bounds = array<i64: 8, 8>}, {transform_indices = @transform_2, window_bounds = array<i64: 256, 512>}, {transform_indices = @transform_3, window_bounds = array<i64: 8, 512>}]} {
    %c0 = arith.constant 0 : index
    %c0_0 = arith.constant 0 : index
    %0 = vector.load %arg1[%c0, %c0_0] : memref<8x256xf32, #tpu.memory_space<vmem>>, vector<8x256xf32>
    %c0_1 = arith.constant 0 : index
    %c0_2 = arith.constant 0 : index
    %1 = vector.load %arg2[%c0_1, %c0_2] : memref<8x8xf32, #tpu.memory_space<vmem>>, vector<8x8xf32>
    %cst = arith.constant dense<0.000000e+00> : vector<8x256xf32>
    %2 = tpu.matmul %1, %0, %cst {dimension_numbers = #tpu.dot_dimension_numbers<[1], [0], [0], [1], [0, 0, 1, 1], [], []>} : vector<8x8xf32>, vector<8x256xf32>, vector<8x256xf32> -> vector<8x256xf32>
    %c0_3 = arith.constant 0 : index
    %c0_4 = arith.constant 0 : index
    %3 = vector.load %arg3[%c0_3, %c0_4] : memref<256x512xf32, #tpu.memory_space<vmem>>, vector<256x512xf32>
    %cst_5 = arith.constant dense<0.000000e+00> : vector<8x512xf32>
    %4 = tpu.matmul %2, %3, %cst_5 {dimension_numbers = #tpu.dot_dimension_numbers<[1], [0], [0], [1], [0, 0, 1, 1], [], []>} : vector<8x256xf32>, vector<256x512xf32>, vector<8x512xf32> -> vector<8x512xf32>
    %c0_6 = arith.constant 0 : index
    %c0_7 = arith.constant 0 : index
    %5 = vector.load %arg4[%c0_6, %c0_7] : memref<8x512xf32, #tpu.memory_space<vmem>>, vector<8x512xf32>
    tpu.vector_store %arg4[%c0_6, %c0_7], %4 {strides = array<i32>} : memref<8x512xf32, #tpu.memory_space<vmem>>, vector<8x512xf32>,
    return
  }
  func.func @transform_0(%arg0: i32) -> (i32, i32) {
    %c0_i32 = arith.constant 0 : i32
    %c0_i32_0 = arith.constant 0 : i32
    %c0_i32_1 = arith.constant 0 : i32
    return %c0_i32, %c0_i32_0 : i32, i32
  }
  func.func @transform_1(%arg0: i32) -> (i32, i32) {
    %c0_i32 = arith.constant 0 : i32
    %c0_i32_0 = arith.constant 0 : i32
    %c0_i32_1 = arith.constant 0 : i32
    return %c0_i32, %c0_i32_0 : i32, i32
  }
  func.func @transform_2(%arg0: i32) -> (i32, i32) {
    %c0_i32 = arith.constant 0 : i32
    %c0_i32_0 = arith.constant 0 : i32
    return %c0_i32, %arg0 : i32, i32
  }
  func.func @transform_3(%arg0: i32) -> (i32, i32) {
    %c0_i32 = arith.constant 0 : i32
    %c0_i32_0 = arith.constant 0 : i32
    return %c0_i32, %arg0 : i32, i32
  }
}

</mosaic_0001>

<bundles_post_ra>
// kernel: tpu_custom_call.1
= control target key start
LH: loop header
LB: loop body
LE: loop exit
PB: predicated region body
PF: predicated region fallthrough
CT: control target
= control target key end

     0   :  { %8 = vsyncpa [#allocation3], 0  ;;  %s1270_s0 = inlined_call_operand.hbm [shape: f32[8,256], index: 0, kind: input, shape index: {}]   ;;  %s1271_s1 = inlined_call_operand.hbm [shape: f32[8,8], index: 1, kind: input, shape index: {}]   ;;  %s1272_s2 = inlined_call_operand.hbm [shape: f32[256,1024], index: 2, kind: input, shape index: {}]   ;;  %s1273_s3 = inlined_call_operand.hbm [shape: f32[8,1024], index: 3, kind: output, shape index: {}]  }
   0x1   :  { %9 = vsyncpa [#allocation6], 0 }
   0x2   :  { %10 = vsyncpa [#allocation4], 0 }
   0x3   :  { %12 = vsyncpa [#allocation4 + $0x1], 0  ;;  %s944_s12 = smov 0   ;;  %s946_s13 = smov 0  }
   0x4   :  { %s948_s14 = smov 0   ;;  %s950_s15 = smov 0  }
   0x5 LB: > { %s965_s16 = sadd.s32 4294967295, %s914_s15   ;;  %s670_s17 = sadd.s32 4294967294, %s914_s15   ;;  %s914_s15 = sphi %s950_s15, %s1298_s15   ;;  %s910_s14 = sphi %s948_s14, %s1297_s14   ;;  %s906_s13 = sphi %s946_s13, %s1296_s13   ;;  %s902_s12 = sphi %s944_s12, %s1295_s12  }
   0x6   : > { %s969_s18 = sadd.s32 1, %s914_s15   ;;  %s67_s19 = sadd.s32 1, %s910_s14 }
   0x7   : > { %s64_s20 = ssub.s32 %s914_s15, %s969_s18  ;;  %p74_p0 = scmp.ne.s32.totalorder %s910_s14, %s906_s13 }
   0x8   : > { %p65_p1 = scmp.eq.s32.totalorder %s64_s20, 0  ;;  %p75_p2 = scmp.eq.s32.totalorder %s914_s15, 0 }
   0x9   : > { %p80_p3 = scmp.ne.s32.totalorder %s906_s13, %s902_s12  ;;  %p1274_p4 = scmp.eq.s32.totalorder %s965_s16, 0 }
   0xa   : > { %s981_s21 = scalar_select %p65_p1, %s910_s14, %s67_s19  }
   0xb   : > { %p983_p5 = por %p75_p2, %p74_p0  ;;  %p989_p6 = por %p1274_p4, %p80_p3 }
   0xc   : > { %p104_p7 = scmp.eq.s32.totalorder %s965_s16, 1  ;;  %p110_p8 = scmp.eq.s32.totalorder %s670_s17, 1 }
   0xd   : > { %s1279_s23 = scalar_select %p989_p6, 1, 0 }
   0xe   : > { %p671_p9 = scmp.ge.s32.totalorder %s914_s15, 1  ;;  %p117_p10 = scmp.lt.s32.totalorder %s914_s15, 3 }
   0xf   : > { %p996_p11 = por %p104_p7, %p74_p0  ;;  %p1000_p12 = por %p110_p8, %p80_p3 }
  0x10   : > { %p1004_p13 = pnand %p671_p9, %p117_p10  ;;  %s916_s27 = smov [#allocation2]  }
  0x11   : > { %s1280_s24 = scalar_select %p996_p11, 1, 0 }
  0x12   : > { %s1281_s25 = scalar_select %p1000_p12, 1, 0 }
  0x13   : > { %s1282_s26 = scalar_select %p1004_p13, 1, 0 }
  0x14   : > { %p703_p2 = pneg %p1004_p13  ;;  %s130_s28 = sshll.u32 %s916_s27, 4  ;;  %s131_s28 = int_to_ptr.vmem [resolvable:$true] %s130_s28 }
  0x15   : > { %p720_p4 = scmp.lt.s32.totalorder %s914_s15, 2  ;;  %p1283_p0 = scmp.eq.s32.totalorder %s965_s16, 0 }
  0x16   : > { %s917_s4 = smov [#allocation5]   ;;  %s773_s6 = scalar_lea.vmem %s131_s28, 256 }
  0x17   : > { %p1014_p7 = pnand %p703_p2, %p1283_p0  ;;  %p1020_p3 = pnand %p720_p4, %p983_p5 }
  0x18   : > { %s141_s5 = sshll.u32 %s917_s4, 4  ;;  %p774_p9 = scmp.ne.s32.totalorder %s131_s28, %s773_s6  ;;  %s142_s5 = int_to_ptr.vmem [resolvable:$true] %s141_s5 }
  0x19   : > { %p764_p8 = pneg %p1014_p7  ;;  %p781_p0 = scmp.lt.s32.totalorder %s131_s28, %s131_s28 }
  0x1a   : > { %p782_p1 = scmp.lt.s32.totalorder %s773_s6, %s773_s6 }
  0x1b   : > { %p776_p10 = pnand %p774_p9, %p764_p8 }
  0x1c   : > { %p783_p12 = por %p782_p1, %p781_p0 }
  0x1d   : > { %p777_p2 = pneg %p776_p10 }
  0x1f   : > { %p784_p11 = pnand %p783_p12, %p777_p2 }
  0x21   : > { %787 = shalt.err (!%p784_p11)
}
  0x22   : > { %706 = dma.hbm_to_vmem [thread:$0]  (!%p1014_p7), %s1270_s0, 256, %s131_s28, [#allocation3]  }
  0x23   : > { %s152_s9 = sand.u32 1, %s914_s15   ;;  %s799_s10 = scalar_lea.vmem %s142_s5, 128 }
  0x24   : > { %p800_p4 = scmp.ne.s32.totalorder %s142_s5, %s799_s10  ;;  %p807_p10 = scmp.lt.s32.totalorder %s142_s5, %s142_s5 }
  0x25   : > { %p808_p6 = scmp.lt.s32.totalorder %s799_s10, %s799_s10 }
  0x26   : > { %p802_p5 = pnand %p800_p4, %p764_p8 }
  0x27   : > { %p809_p1 = por %p808_p6, %p807_p10 }
  0x28   : > { %p803_p9 = pneg %p802_p5 }
  0x2a   : > { %p810_p12 = pnand %p809_p1, %p803_p9 }
  0x2c   : > { %813 = shalt.err (!%p810_p12)
}
  0x2d   : > { %709 = dma.hbm_to_vmem [thread:$0]  (!%p1014_p7), %s1271_s1, 128, %s142_s5, [#allocation6]  }
  0x2e   : > { %s154_s19 = sand.u32 1, %s910_s14   ;;  %s689_s22 = sshll.u32 %s914_s15, 9 }
  0x2f   : > { %s675_s20 = sshll.u32 %s154_s19, 10  ;;  %s1048_s4 = scalar_lea.hbm %s1272_s2, %s689_s22 }
  0x30   : > { %s156_s6 = scalar_lea.vmem [#allocation7], %s675_s20  ;;  %s1052_s7 = scalar_lea.sflag [#allocation3], %s152_s9 }
  0x31   : > { %s163_s29 = sshll.u32 %s156_s6, 4  ;;  %s814_s8 = scalar_lea.hbm %s1048_s4, 16384  ;;  %s1050_s29 = int_to_ptr.vmem [resolvable:$true] %s163_s29 }
  0x32   : > { %p815_p6 = scmp.ne.s32.totalorder %s1048_s4, %s814_s8  ;;  %p816_p11 = pneg %p1020_p3 }
  0x33   : > { %s819_s11 = scalar_lea.hbm %s1272_s2, 32768  ;;  %p820_p2 = scmp.lt.s32.totalorder %s1048_s4, %s1272_s2 }
  0x34   : > { %p817_p7 = pnand %p816_p11, %p815_p6  ;;  %p821_p0 = scmp.lt.s32.totalorder %s819_s11, %s814_s8 }
  0x36   : > { %p818_p8 = pneg %p817_p7  ;;  %p822_p4 = por %p821_p0, %p820_p2 }
  0x38   : > { %p823_p5 = pnand %p822_p4, %p818_p8 }
  0x3a   : > { %826 = shalt.err (!%p823_p5)
}
  0x3b   : > { %s827_s9 = scalar_lea.vmem %s1050_s29, 16384  ;;  %s918_s20 = smov [#allocation7]  }
  0x3c   : > { %p828_p9 = scmp.ne.s32.totalorder %s1050_s29, %s827_s9  ;;  %s832_s22 = sshll.u32 %s918_s20, 4  ;;  %s833_s22 = int_to_ptr.vmem [resolvable:$false] %s832_s22 }
  0x3d   : > { %s834_s27 = scalar_lea.vmem %s833_s22, 32768  ;;  %p835_p12 = scmp.lt.s32.totalorder %s1050_s29, %s833_s22 }
  0x3e   : > { %p830_p10 = pnand %p828_p9, %p816_p11  ;;  %p836_p6 = scmp.lt.s32.totalorder %s834_s27, %s827_s9 }
  0x40   : > { %p831_p1 = pneg %p830_p10  ;;  %p837_p7 = por %p836_p6, %p835_p12 }
  0x42   : > { %p838_p13 = pnand %p837_p7, %p831_p1 }
  0x44   : > { %841 = shalt.err (!%p838_p13)
}
  0x45   : > { %s919_s28 = smov 1024   ;;  %s920_s6 = smov 512  }
  0x46   : > { %s921_s8 = smov 32   ;;  %p1286_p11 = scmp.ne.s32.totalorder %s1282_s26, 0 }
  0x47   : > { %713 = dma.hbm_to_vmem [thread:$0]  (!%p1020_p3), %s1048_s4, 16384, %s1050_s29, %s1052_s7, %s919_s28, %s920_s6, %s921_s8  }
  0x48   : > { %175 = sbr.rel (%p1286_p11) target bundleno = 494 (0x1ee), region = 32  ;;  %p1287_p8 = scmp.eq.s32.totalorder (!%p1286_p11), %s965_s16, 0 }
  0x4d   : > { %885 = dma.done.wait (%p1287_p8), [#allocation3], 256   ;;  %p1288_p2 = pmov %p1287_p8 }
  0x4f   : > { %887 = vsyncadd (%p1288_p2), [#allocation3], 4294967040  ;;  %p1289_p13 = pmov %p1288_p2 }
  0x50   : > { %p1290_p0 = pmov %p1288_p2 }
  0x51   : > { %889 = dma.done.wait (%p1289_p13), [#allocation6], 128  }
  0x52   : > { %891 = vsyncadd (%p1290_p0), [#allocation6], 4294967168  ;;  %s185_s30 = sand.u32 1, %s965_s16   ;;  %s1085_s4 = sand.u32 1, %s906_s13  }
  0x53   : > { %s681_s26 = sshll.u32 %s1085_s4, 10  ;;  %s186_s29 = scalar_lea.sflag [#allocation3], %s185_s30 }
  0x54   : > { %s1088_s7 = scalar_lea.vmem [#allocation7], %s681_s26  ;;  %p1291_p3 = scmp.ne.s32.totalorder %s1279_s23, 0 }
  0x56   : > { %893 = dma.done.wait (%p1291_p3), %s186_s29, 16384  }
  0x57   : > { %895 = vsyncadd (%p1291_p3), %s186_s29, 4294950912  ;;  %v922_v0 = vmov 0.0   ;;  %v215_v1 = vld [vmem:[#allocation2 + $0x8] sm:$0xff]  ;;  %v214_v2 = vld [vmem:[#allocation2] sm:$0xff]  ;;  %vm217_vm0 = vcmask 64512   ;;  %s682_s23 = sshll.u32 %s1085_s4, 5 }
  0x58   : > { %285 = vmatprep.mubr.f32.mxu0 %v922_v0  ;;  %v216_v3 = vld [vmem:[#allocation5] sm:$0xff]  ;;  %251 = vmatprep.subr.mxu0 %v215_v1  ;;  %v353_v4 = vld [vmem:[%s1088_s7 + $0x1e8] sm:$0xff]  ;;  %v352_v6 = vld [vmem:[%s1088_s7 + $0x1e0] sm:$0xff]  ;;  %s211_s5 = scalar_lea.vmem [#allocation8], %s682_s23  ;;  %s690_s11 = sshll.u32 %s965_s16, 9 }
  0x59   : > { %v355_v5 = vld [vmem:[%s1088_s7 + $0x1f8] sm:$0xff]  ;;  %252 = vmatpush1.msra.mxu0 %v214_v2  ;;  %420 = vmatprep.subr.mxu1 %v353_v4  ;;  %v354_v7 = vld [vmem:[%s1088_s7 + $0x1f0] sm:$0xff]  ;;  %v349_v8 = vld [vmem:[%s1088_s7 + $0x1c8] sm:$0xff]  ;;  %s581_s10 = sshll.u32 %s211_s5, 4  ;;  %s1229_s9 = scalar_lea.hbm %s1273_s3, %s690_s11  ;;  %s1224_s10 = int_to_ptr.vmem [resolvable:$true] %s581_s10 }
  0x5a   : > { %v351_v9 = vld [vmem:[%s1088_s7 + $0x1d8] sm:$0xff]  ;;  %683 = vmatmul.mubr.msk.f32.vlgmr.msra.gmra.mxu0 %vm217_vm0, %v216_v3  ;;  %491 = vmatprep.subr.mxu0 %v355_v5  ;;  %v348_v10 = vld [vmem:[%s1088_s7 + $0x1c0] sm:$0xff]  ;;  %v350_v11 = vld [vmem:[%s1088_s7 + $0x1d0] sm:$0xff]  ;;  %s567_s20 = scalar_lea.sflag [#allocation4], %s1085_s4  ;;  %s842_s16 = scalar_lea.vmem %s1224_s10, 512 }
  0x5b   : > { %421 = vmatpush1.msra.mxu1 %v352_v6  ;;  %492 = vmatpush1.msra.mxu0 %v354_v7  ;;  %v345_v12 = vld [vmem:[%s1088_s7 + $0x1a8] sm:$0xff]  ;;  %v347_v13 = vld [vmem:[%s1088_s7 + $0x1b8] sm:$0xff]  ;;  %v344_v14 = vld [vmem:[%s1088_s7 + $0x1a0] sm:$0xff]  ;;  %p843_p4 = scmp.ne.s32.totalorder %s1224_s10, %s842_s16  ;;  %p1292_p5 = scmp.ne.s32.totalorder %s1280_s24, 0 }
  0x5c   : > { %422 = vmatprep.subr.mxu1 %v349_v8  ;;  %493 = vmatprep.subr.mxu0 %v351_v9  ;;  %v346_v15 = vld [vmem:[%s1088_s7 + $0x1b0] sm:$0xff]  ;;  %v341_v16 = vld [vmem:[%s1088_s7 + $0x188] sm:$0xff]  ;;  %v343_v17 = vld [vmem:[%s1088_s7 + $0x198] sm:$0xff]  ;;  %s923_s22 = smov [#allocation8]  }
  0x5d   : > { %423 = vmatpush1.msra.mxu1 %v348_v10  ;;  %494 = vmatpush1.msra.mxu0 %v350_v11  ;;  %v340_v18 = vld [vmem:[%s1088_s7 + $0x180] sm:$0xff]  ;;  %v342_v19 = vld [vmem:[%s1088_s7 + $0x190] sm:$0xff]  ;;  %v337_v20 = vld [vmem:[%s1088_s7 + $0x168] sm:$0xff]  ;;  %p844_p9 = pnand %p843_p4, %p1292_p5  ;;  %s846_s27 = sshll.u32 %s923_s22, 4  ;;  %s847_s27 = int_to_ptr.vmem [resolvable:$false] %s846_s27 }
  0x5e   : > { %424 = vmatprep.subr.mxu1 %v345_v12  ;;  %495 = vmatprep.subr.mxu0 %v347_v13  ;;  %v339_v21 = vld [vmem:[%s1088_s7 + $0x178] sm:$0xff]  ;;  %v336_v22 = vld [vmem:[%s1088_s7 + $0x160] sm:$0xff]  ;;  %v338_v23 = vld [vmem:[%s1088_s7 + $0x170] sm:$0xff]  ;;  %s848_s28 = scalar_lea.vmem %s847_s27, 1024  ;;  %p849_p1 = scmp.lt.s32.totalorder %s1224_s10, %s847_s27 }
  0x5f   : > { %425 = vmatpush1.msra.mxu1 %v344_v14  ;;  %496 = vmatpush1.msra.mxu0 %v346_v15  ;;  %v333_v24 = vld [vmem:[%s1088_s7 + $0x148] sm:$0xff]  ;;  %v335_v25 = vld [vmem:[%s1088_s7 + $0x158] sm:$0xff]  ;;  %v332_v26 = vld [vmem:[%s1088_s7 + $0x140] sm:$0xff]  ;;  %p845_p10 = pneg %p844_p9  ;;  %p850_p12 = scmp.lt.s32.totalorder %s848_s28, %s842_s16 }
  0x60   : > { %426 = vmatprep.subr.mxu1 %v341_v16  ;;  %497 = vmatprep.subr.mxu0 %v343_v17  ;;  %v334_v27 = vld [vmem:[%s1088_s7 + $0x150] sm:$0xff]  ;;  %v329_v28 = vld [vmem:[%s1088_s7 + $0x128] sm:$0xff]  ;;  %v331_v29 = vld [vmem:[%s1088_s7 + $0x138] sm:$0xff] }
  0x61   : > { %427 = vmatpush1.msra.mxu1 %v340_v18  ;;  %498 = vmatpush1.msra.mxu0 %v342_v19  ;;  %v328_v30 = vld [vmem:[%s1088_s7 + $0x120] sm:$0xff]  ;;  %v330_v31 = vld [vmem:[%s1088_s7 + $0x130] sm:$0xff]  ;;  %v325_v32 = vld [vmem:[%s1088_s7 + $0x108] sm:$0xff]  ;;  %p851_p6 = por %p850_p12, %p849_p1 }
  0x62   : > { %428 = vmatprep.subr.mxu1 %v337_v20  ;;  %499 = vmatprep.subr.mxu0 %v339_v21  ;;  %v327_v33 = vld [vmem:[%s1088_s7 + $0x118] sm:$0xff]  ;;  %v324_v34 = vld [vmem:[%s1088_s7 + $0x100] sm:$0xff]  ;;  %v326_v35 = vld [vmem:[%s1088_s7 + $0x110] sm:$0xff] }
  0x63   : > { %429 = vmatpush1.msra.mxu1 %v336_v22  ;;  %500 = vmatpush1.msra.mxu0 %v338_v23  ;;  %v321_v36 = vld [vmem:[%s1088_s7 + $0xe8] sm:$0xff]  ;;  %v323_v37 = vld [vmem:[%s1088_s7 + $0xf8] sm:$0xff]  ;;  %v320_v38 = vld [vmem:[%s1088_s7 + $0xe0] sm:$0xff]  ;;  %p852_p7 = pnand %p851_p6, %p845_p10 }
  0x64   : > { %430 = vmatprep.subr.mxu1 %v333_v24  ;;  %501 = vmatprep.subr.mxu0 %v335_v25  ;;  %v322_v39 = vld [vmem:[%s1088_s7 + $0xf0] sm:$0xff]  ;;  %v317_v40 = vld [vmem:[%s1088_s7 + $0xc8] sm:$0xff]  ;;  %v319_v41 = vld [vmem:[%s1088_s7 + $0xd8] sm:$0xff] }
  0x65   : > { %431 = vmatpush1.msra.mxu1 %v332_v26  ;;  %502 = vmatpush1.msra.mxu0 %v334_v27  ;;  %v316_v42 = vld [vmem:[%s1088_s7 + $0xc0] sm:$0xff]  ;;  %v318_v43 = vld [vmem:[%s1088_s7 + $0xd0] sm:$0xff]  ;;  %v313_v44 = vld [vmem:[%s1088_s7 + $0xa8] sm:$0xff] }
  0x66   : > { %432 = vmatprep.subr.mxu1 %v329_v28  ;;  %503 = vmatprep.subr.mxu0 %v331_v29  ;;  %v315_v45 = vld [vmem:[%s1088_s7 + $0xb8] sm:$0xff]  ;;  %v312_v46 = vld [vmem:[%s1088_s7 + $0xa0] sm:$0xff]  ;;  %v314_v47 = vld [vmem:[%s1088_s7 + $0xb0] sm:$0xff] }
  0x67   : > { %433 = vmatpush1.msra.mxu1 %v328_v30  ;;  %504 = vmatpush1.msra.mxu0 %v330_v31  ;;  %v309_v48 = vld [vmem:[%s1088_s7 + $0x88] sm:$0xff]  ;;  %v311_v49 = vld [vmem:[%s1088_s7 + $0x98] sm:$0xff]  ;;  %v308_v50 = vld [vmem:[%s1088_s7 + $0x80] sm:$0xff] }
  0x68   : > { %434 = vmatprep.subr.mxu1 %v325_v32  ;;  %505 = vmatprep.subr.mxu0 %v327_v33  ;;  %v310_v51 = vld [vmem:[%s1088_s7 + $0x90] sm:$0xff]  ;;  %v305_v52 = vld [vmem:[%s1088_s7 + $0x68] sm:$0xff]  ;;  %v307_v53 = vld [vmem:[%s1088_s7 + $0x78] sm:$0xff] }
  0x69   : > { %435 = vmatpush1.msra.mxu1 %v324_v34  ;;  %506 = vmatpush1.msra.mxu0 %v326_v35  ;;  %v304_v54 = vld [vmem:[%s1088_s7 + $0x60] sm:$0xff]  ;;  %v306_v55 = vld [vmem:[%s1088_s7 + $0x70] sm:$0xff]  ;;  %v301_v56 = vld [vmem:[%s1088_s7 + $0x48] sm:$0xff] }
  0x6a   : > { %436 = vmatprep.subr.mxu1 %v321_v36  ;;  %507 = vmatprep.subr.mxu0 %v323_v37  ;;  %v303_v57 = vld [vmem:[%s1088_s7 + $0x58] sm:$0xff]  ;;  %v300_v58 = vld [vmem:[%s1088_s7 + $0x40] sm:$0xff]  ;;  %v302_v59 = vld [vmem:[%s1088_s7 + $0x50] sm:$0xff] }
  0x6b   : > { %437 = vmatpush1.msra.mxu1 %v320_v38  ;;  %508 = vmatpush1.msra.mxu0 %v322_v39  ;;  %v297_v60 = vld [vmem:[%s1088_s7 + $0x28] sm:$0xff]  ;;  %v299_v61 = vld [vmem:[%s1088_s7 + $0x38] sm:$0xff]  ;;  %v296_v62 = vld [vmem:[%s1088_s7 + $0x20] sm:$0xff] }
  0x6c   : > { %438 = vmatprep.subr.mxu1 %v317_v40  ;;  %509 = vmatprep.subr.mxu0 %v319_v41  ;;  %v298_v63 = vld [vmem:[%s1088_s7 + $0x30] sm:$0xff]  ;;  %v293_v0 = vld [vmem:[%s1088_s7 + $0x8] sm:$0xff]  ;;  %v295_v1 = vld [vmem:[%s1088_s7 + $0x18] sm:$0xff] }
  0x6d   : > { %439 = vmatpush1.msra.mxu1 %v316_v42  ;;  %510 = vmatpush1.msra.mxu0 %v318_v43  ;;  %v292_v2 = vld [vmem:[%s1088_s7] sm:$0xff]  ;;  %v294_v3 = vld [vmem:[%s1088_s7 + $0x10] sm:$0xff]  ;;  %v417_v4 = vld [vmem:[%s1088_s7 + $0x3e8] sm:$0xff] }
  0x6e   : > { %440 = vmatprep.subr.mxu1 %v313_v44  ;;  %511 = vmatprep.subr.mxu0 %v315_v45  ;;  %v419_v5 = vld [vmem:[%s1088_s7 + $0x3f8] sm:$0xff]  ;;  %v416_v6 = vld [vmem:[%s1088_s7 + $0x3e0] sm:$0xff]  ;;  %v418_v7 = vld [vmem:[%s1088_s7 + $0x3f0] sm:$0xff] }
  0x6f   : > { %441 = vmatpush1.msra.mxu1 %v312_v46  ;;  %512 = vmatpush1.msra.mxu0 %v314_v47  ;;  %v413_v8 = vld [vmem:[%s1088_s7 + $0x3c8] sm:$0xff]  ;;  %v415_v9 = vld [vmem:[%s1088_s7 + $0x3d8] sm:$0xff]  ;;  %v412_v10 = vld [vmem:[%s1088_s7 + $0x3c0] sm:$0xff] }
  0x70   : > { %442 = vmatprep.subr.mxu1 %v309_v48  ;;  %513 = vmatprep.subr.mxu0 %v311_v49  ;;  %v414_v11 = vld [vmem:[%s1088_s7 + $0x3d0] sm:$0xff]  ;;  %v409_v12 = vld [vmem:[%s1088_s7 + $0x3a8] sm:$0xff]  ;;  %v411_v13 = vld [vmem:[%s1088_s7 + $0x3b8] sm:$0xff] }
  0x71   : > { %443 = vmatpush1.msra.mxu1 %v308_v50  ;;  %514 = vmatpush1.msra.mxu0 %v310_v51  ;;  %v408_v14 = vld [vmem:[%s1088_s7 + $0x3a0] sm:$0xff]  ;;  %v410_v15 = vld [vmem:[%s1088_s7 + $0x3b0] sm:$0xff]  ;;  %v405_v16 = vld [vmem:[%s1088_s7 + $0x388] sm:$0xff] }
  0x72   : > { %444 = vmatprep.subr.mxu1 %v305_v52  ;;  %515 = vmatprep.subr.mxu0 %v307_v53  ;;  %v407_v17 = vld [vmem:[%s1088_s7 + $0x398] sm:$0xff]  ;;  %v404_v18 = vld [vmem:[%s1088_s7 + $0x380] sm:$0xff]  ;;  %v406_v19 = vld [vmem:[%s1088_s7 + $0x390] sm:$0xff] }
  0x73   : > { %445 = vmatpush1.msra.mxu1 %v304_v54  ;;  %516 = vmatpush1.msra.mxu0 %v306_v55  ;;  %v401_v20 = vld [vmem:[%s1088_s7 + $0x368] sm:$0xff]  ;;  %v403_v21 = vld [vmem:[%s1088_s7 + $0x378] sm:$0xff]  ;;  %v400_v22 = vld [vmem:[%s1088_s7 + $0x360] sm:$0xff] }
  0x74   : > { %446 = vmatprep.subr.mxu1 %v301_v56  ;;  %517 = vmatprep.subr.mxu0 %v303_v57  ;;  %v402_v23 = vld [vmem:[%s1088_s7 + $0x370] sm:$0xff]  ;;  %v397_v24 = vld [vmem:[%s1088_s7 + $0x348] sm:$0xff]  ;;  %v399_v25 = vld [vmem:[%s1088_s7 + $0x358] sm:$0xff] }
  0x75   : > { %447 = vmatpush1.msra.mxu1 %v300_v58  ;;  %518 = vmatpush1.msra.mxu0 %v302_v59  ;;  %v396_v26 = vld [vmem:[%s1088_s7 + $0x340] sm:$0xff]  ;;  %v398_v27 = vld [vmem:[%s1088_s7 + $0x350] sm:$0xff]  ;;  %v393_v28 = vld [vmem:[%s1088_s7 + $0x328] sm:$0xff] }
  0x76   : > { %448 = vmatprep.subr.mxu1 %v297_v60  ;;  %519 = vmatprep.subr.mxu0 %v299_v61  ;;  %v395_v29 = vld [vmem:[%s1088_s7 + $0x338] sm:$0xff]  ;;  %v392_v30 = vld [vmem:[%s1088_s7 + $0x320] sm:$0xff]  ;;  %v394_v31 = vld [vmem:[%s1088_s7 + $0x330] sm:$0xff] }
  0x77   : > { %449 = vmatpush1.msra.mxu1 %v296_v62  ;;  %520 = vmatpush1.msra.mxu0 %v298_v63  ;;  %v389_v32 = vld [vmem:[%s1088_s7 + $0x308] sm:$0xff]  ;;  %v391_v33 = vld [vmem:[%s1088_s7 + $0x318] sm:$0xff]  ;;  %v388_v34 = vld [vmem:[%s1088_s7 + $0x300] sm:$0xff] }
  0x78   : > { %450 = vmatprep.subr.mxu1 %v293_v0  ;;  %521 = vmatprep.subr.mxu0 %v295_v1  ;;  %v390_v35 = vld [vmem:[%s1088_s7 + $0x310] sm:$0xff]  ;;  %v385_v36 = vld [vmem:[%s1088_s7 + $0x2e8] sm:$0xff]  ;;  %v387_v37 = vld [vmem:[%s1088_s7 + $0x2f8] sm:$0xff] }
  0x79   : > { %451 = vmatpush1.msra.mxu1 %v292_v2  ;;  %522 = vmatpush1.msra.mxu0 %v294_v3  ;;  %v384_v38 = vld [vmem:[%s1088_s7 + $0x2e0] sm:$0xff]  ;;  %v386_v39 = vld [vmem:[%s1088_s7 + $0x2f0] sm:$0xff]  ;;  %v381_v40 = vld [vmem:[%s1088_s7 + $0x2c8] sm:$0xff] }
  0x7a   : > { %452 = vmatprep.subr.mxu1 %v417_v4  ;;  %523 = vmatprep.subr.mxu0 %v419_v5  ;;  %v383_v41 = vld [vmem:[%s1088_s7 + $0x2d8] sm:$0xff]  ;;  %v380_v42 = vld [vmem:[%s1088_s7 + $0x2c0] sm:$0xff]  ;;  %v382_v43 = vld [vmem:[%s1088_s7 + $0x2d0] sm:$0xff] }
  0x7b   : > { %453 = vmatpush2.msra.mxu1 %v416_v6  ;;  %524 = vmatpush2.msra.mxu0 %v418_v7  ;;  %v377_v44 = vld [vmem:[%s1088_s7 + $0x2a8] sm:$0xff]  ;;  %v379_v45 = vld [vmem:[%s1088_s7 + $0x2b8] sm:$0xff]  ;;  %v376_v46 = vld [vmem:[%s1088_s7 + $0x2a0] sm:$0xff] }
  0x7c   : > { %454 = vmatprep.subr.mxu1 %v413_v8  ;;  %525 = vmatprep.subr.mxu0 %v415_v9  ;;  %v378_v47 = vld [vmem:[%s1088_s7 + $0x2b0] sm:$0xff]  ;;  %v373_v48 = vld [vmem:[%s1088_s7 + $0x288] sm:$0xff]  ;;  %v375_v49 = vld [vmem:[%s1088_s7 + $0x298] sm:$0xff] }
  0x7d   : > { %455 = vmatpush2.msra.mxu1 %v412_v10  ;;  %526 = vmatpush2.msra.mxu0 %v414_v11  ;;  %v372_v50 = vld [vmem:[%s1088_s7 + $0x280] sm:$0xff]  ;;  %v374_v51 = vld [vmem:[%s1088_s7 + $0x290] sm:$0xff]  ;;  %v369_v52 = vld [vmem:[%s1088_s7 + $0x268] sm:$0xff] }
  0x7e   : > { %456 = vmatprep.subr.mxu1 %v409_v12  ;;  %527 = vmatprep.subr.mxu0 %v411_v13  ;;  %v371_v53 = vld [vmem:[%s1088_s7 + $0x278] sm:$0xff]  ;;  %v368_v54 = vld [vmem:[%s1088_s7 + $0x260] sm:$0xff]  ;;  %v370_v55 = vld [vmem:[%s1088_s7 + $0x270] sm:$0xff] }
  0x7f   : > { %457 = vmatpush2.msra.mxu1 %v408_v14  ;;  %528 = vmatpush2.msra.mxu0 %v410_v15  ;;  %v365_v56 = vld [vmem:[%s1088_s7 + $0x248] sm:$0xff]  ;;  %v367_v57 = vld [vmem:[%s1088_s7 + $0x258] sm:$0xff]  ;;  %v364_v58 = vld [vmem:[%s1088_s7 + $0x240] sm:$0xff] }
  0x80   : > { %458 = vmatprep.subr.mxu1 %v405_v16  ;;  %529 = vmatprep.subr.mxu0 %v407_v17  ;;  %v366_v59 = vld [vmem:[%s1088_s7 + $0x250] sm:$0xff]  ;;  %v361_v60 = vld [vmem:[%s1088_s7 + $0x228] sm:$0xff]  ;;  %v363_v61 = vld [vmem:[%s1088_s7 + $0x238] sm:$0xff] }
  0x81   : > { %459 = vmatpush2.msra.mxu1 %v404_v18  ;;  %530 = vmatpush2.msra.mxu0 %v406_v19  ;;  %v360_v62 = vld [vmem:[%s1088_s7 + $0x220] sm:$0xff]  ;;  %v362_v63 = vld [vmem:[%s1088_s7 + $0x230] sm:$0xff]  ;;  %v357_v0 = vld [vmem:[%s1088_s7 + $0x208] sm:$0xff] }
  0x82   : > { %460 = vmatprep.subr.mxu1 %v401_v20  ;;  %531 = vmatprep.subr.mxu0 %v403_v21  ;;  %v359_v1 = vld [vmem:[%s1088_s7 + $0x218] sm:$0xff]  ;;  %v356_v2 = vld [vmem:[%s1088_s7 + $0x200] sm:$0xff]  ;;  %v358_v3 = vld [vmem:[%s1088_s7 + $0x210] sm:$0xff] }
  0x83   : > { %461 = vmatpush2.msra.mxu1 %v400_v22  ;;  %532 = vmatpush2.msra.mxu0 %v402_v23 }
  0x84   : > { %462 = vmatprep.subr.mxu1 %v397_v24  ;;  %533 = vmatprep.subr.mxu0 %v399_v25 }
  0x85   : > { %463 = vmatpush2.msra.mxu1 %v396_v26  ;;  %534 = vmatpush2.msra.mxu0 %v398_v27 }
  0x86   : > { %464 = vmatprep.subr.mxu1 %v393_v28  ;;  %535 = vmatprep.subr.mxu0 %v395_v29 }
  0x87   : > { %465 = vmatpush2.msra.mxu1 %v392_v30  ;;  %536 = vmatpush2.msra.mxu0 %v394_v31 }
  0x88   : > { %466 = vmatprep.subr.mxu1 %v389_v32  ;;  %537 = vmatprep.subr.mxu0 %v391_v33 }
  0x89   : > { %467 = vmatpush2.msra.mxu1 %v388_v34  ;;  %538 = vmatpush2.msra.mxu0 %v390_v35 }
  0x8a   : > { %468 = vmatprep.subr.mxu1 %v385_v36  ;;  %539 = vmatprep.subr.mxu0 %v387_v37 }
  0x8b   : > { %469 = vmatpush2.msra.mxu1 %v384_v38  ;;  %540 = vmatpush2.msra.mxu0 %v386_v39 }
  0x8c   : > { %470 = vmatprep.subr.mxu1 %v381_v40  ;;  %541 = vmatprep.subr.mxu0 %v383_v41 }
  0x8d   : > { %471 = vmatpush2.msra.mxu1 %v380_v42  ;;  %542 = vmatpush2.msra.mxu0 %v382_v43 }
  0x8e   : > { %472 = vmatprep.subr.mxu1 %v377_v44  ;;  %543 = vmatprep.subr.mxu0 %v379_v45 }
  0x8f   : > { %473 = vmatpush2.msra.mxu1 %v376_v46  ;;  %544 = vmatpush2.msra.mxu0 %v378_v47 }
  0x90   : > { %474 = vmatprep.subr.mxu1 %v373_v48  ;;  %545 = vmatprep.subr.mxu0 %v375_v49 }
  0x91   : > { %475 = vmatpush2.msra.mxu1 %v372_v50  ;;  %546 = vmatpush2.msra.mxu0 %v374_v51 }
  0x92   : > { %476 = vmatprep.subr.mxu1 %v369_v52  ;;  %547 = vmatprep.subr.mxu0 %v371_v53 }
  0x93   : > { %477 = vmatpush2.msra.mxu1 %v368_v54  ;;  %548 = vmatpush2.msra.mxu0 %v370_v55 }
  0x94   : > { %478 = vmatprep.subr.mxu1 %v365_v56  ;;  %549 = vmatprep.subr.mxu0 %v367_v57 }
  0x95   : > { %479 = vmatpush2.msra.mxu1 %v364_v58  ;;  %550 = vmatpush2.msra.mxu0 %v366_v59 }
  0x96   : > { %480 = vmatprep.subr.mxu1 %v361_v60  ;;  %551 = vmatprep.subr.mxu0 %v363_v61 }
  0x97   : > { %481 = vmatpush2.msra.mxu1 %v360_v62  ;;  %552 = vmatpush2.msra.mxu0 %v362_v63 }
  0x98   : > { %482 = vmatprep.subr.mxu1 %v357_v0  ;;  %553 = vmatprep.subr.mxu0 %v359_v1 }
  0x99   : > { %483 = vmatpush2.msra.mxu1 %v356_v2  ;;  %554 = vmatpush2.msra.mxu0 %v358_v3 }
 0x11a   : > { %v287_v4 = vpop.f32.mrf.mxu0 }
 0x11c   : > { %v289_v5 = vpop.f32.mrf.mxu0 }
 0x11d   : > { %484 = vmatprep.mubr.f32.mxu1 %v289_v5  ;;  %555 = vmatprep.mubr.f32.mxu0 %v289_v5 }
 0x11e   : > { %485 = vmatmul.mubr.f32.vlgmr.msra.gmra.mxu1 %v287_v4  ;;  %556 = vmatmul.mubr.f32.vlgmr.msra.gmra.mxu0 %v287_v4 }
 0x1de   : > { %v486_v6 = vpop.f32.mrf.mxu1  ;;  %v557_v7 = vpop.f32.mrf.mxu0 }
 0x1df   : > { %562 = vst [vmem:[%s211_s5] sm:$0xff] %v486_v6  ;;  %564 = vst [vmem:[%s211_s5 + $0x10] sm:$0xff] %v557_v7 }
 0x1e0   : > { %v488_v8 = vpop.f32.mrf.mxu1  ;;  %v559_v9 = vpop.f32.mrf.mxu0 }
 0x1e1   : > { %563 = vst [vmem:[%s211_s5 + $0x8] sm:$0xff] %v488_v8  ;;  %565 = vst [vmem:[%s211_s5 + $0x18] sm:$0xff] %v559_v9 }
 0x1e2   : > { %855 = shalt.err (!%p852_p7)
}
 0x1e3   : > { %s856_s6 = scalar_lea.hbm %s1229_s9, 512  ;;  %s860_s4 = scalar_lea.hbm %s1273_s3, 1024 }
 0x1e4   : > { %p857_p11 = scmp.ne.s32.totalorder %s1229_s9, %s856_s6  ;;  %p861_p13 = scmp.lt.s32.totalorder %s1229_s9, %s1273_s3 }
 0x1e5   : > { %p862_p0 = scmp.lt.s32.totalorder %s860_s4, %s856_s6 }
 0x1e6   : > { %p858_p8 = pnand %p857_p11, %p1292_p5 }
 0x1e7   : > { %p863_p3 = por %p862_p0, %p861_p13 }
 0x1e8   : > { %p859_p2 = pneg %p858_p8 }
 0x1ea   : > { %p864_p4 = pnand %p863_p3, %p859_p2 }
 0x1ec   : > { %867 = shalt.err (!%p864_p4)
}
 0x1ed   : > { %701 = dma.vmem_to_hbm [thread:$0]  (%p1292_p5), %s1224_s10, 512, %s1229_s9, %s567_s20  }
 0x1ee PF: > { %s593_s7 = sand.u32 1, %s902_s12   ;;  %p1293_p9 = scmp.ne.s32.totalorder %s1281_s25, 0 }
 0x1ef   : > { %p1294_p10 = scmp.ge.s32.totalorder %s914_s15, 2  ;;  %s594_s23 = scalar_lea.sflag [#allocation4], %s593_s7 }
 0x1f1   : > { %p715_p1 = pnand %p1294_p10, %p1293_p9 }
 0x1f3   : > { %p716_p12 = pneg %p715_p1 }
 0x1f5   : > { %897 = dma.done.wait (%p716_p12), %s594_s23, 512  }
 0x1f6   : > { %899 = vsyncadd (%p716_p12), %s594_s23, 4294966784  ;;  %p15_p6 = scmp.ge.s32.totalorder %s969_s18, 4   ;;  %s1295_s12 = smov %s906_s13 }
 0x1f7   : > { %s1296_s13 = smov %s910_s14  ;;  %s1297_s14 = smov %s981_s21 }
 0x1f8   : > { %s1298_s15 = smov %s969_s18  ;;  %17 = sbr.rel (!%p15_p6) target bundleno = 5 (0x5), region = 84 }
 0x1fd   :  { %599 = vsyncpa [#allocation3], 1 }
 0x1fe   :  { %601 = vsyncpa [#allocation3 + $0x1], 1 }
 0x1ff   :  { %602 = vsyncpa [#allocation6], 1 }
 0x200   :  { %603 = vsyncpa [#allocation4], 1 }
 0x201   :  { %605 = vsyncpa [#allocation4 + $0x1], 1 }

</bundles_post_ra>
